<compile_context>
chip_gen: v5e
topology: v5e:2x2
jax: 0.10.0
libtpu: 0.0.40
codegen_flags: <defaults>
</compile_context>

<pallas_src>
import functools

import jax
import jax.numpy as jnp
from jax.experimental import pallas as pl
from jax.experimental.pallas import tpu as pltpu


def _round_up(v, m):
    return ((v + m - 1) // m) * m


# ---------------------------------------------------------------------------
# Pallas kernel: one GCN layer per grid step; the f32 output block is the
# resident running node state (constant block index across the layer axis, so
# it lives in VMEM for the whole grid and is written back to HBM once).
# ---------------------------------------------------------------------------
def gnn_stack_kernel(a_ref, x_ref, w_ref, b_ref, o_ref, *, skip):
    # a_ref: [N, N]    bf16 normalized adjacency (resident, single-buffered)
    # x_ref: [N, D]    bf16 input node features  (resident, read only at l==0)
    # w_ref: [1, D, D] bf16 this layer's weights  (streamed, double-buffered)
    # b_ref: [1, 1, D] bf16 this layer's bias     (streamed, double-buffered)
    # o_ref: [N, D]    f32 output == running accumulator (resident)
    l = pl.program_id(0)

    @pl.when(l == 0)
    def _init():
        o_ref[...] = x_ref[...].astype(jnp.float32)

    x = o_ref[...]                                             # [N, D] f32 state
    # H = X @ W   (bf16 operands -> MXU, f32 accumulation)
    h = jnp.dot(x.astype(jnp.bfloat16), w_ref[0],
                preferred_element_type=jnp.float32)            # [N, D] f32
    # AGG = A_hat @ H
    agg = jnp.dot(a_ref[...], h.astype(jnp.bfloat16),
                  preferred_element_type=jnp.float32)          # [N, D] f32
    h_out = agg + b_ref[0].astype(jnp.float32)                 # bias broadcast
    # NOTE: padded rows also pick up +b here; they are inert (A_hat's padded
    # rows/cols are zero, so they never feed real rows) and the wrapper slices
    # them off — never consume the padded region of the output.
    o_ref[...] = h_out + x if skip else h_out


def gnn_factory_forward(a_p, x_p, w_p, b_p, num_nodes, feat_dim, *,
                        skip_connections=True):
    """Stacked-GNN forward on TPU. All inputs pre-padded to multiples of 128.

    a_p: [N_p, N_p]    bf16 normalized adjacency (padded region is zero)
    x_p: [N_p, D_p]    bf16 node features
    w_p: [L, D_p, D_p] bf16 per-layer weights
    b_p: [L, 1, D_p]   bf16 per-layer biases
    Returns the un-padded [num_nodes, feat_dim] f32 result.
    """
    n_p, d_p = x_p.shape
    layer_nr = w_p.shape[0]

    # VMEM footprint with the chosen buffering (A/X/out single, W/b double).
    vmem_est = (
        n_p * n_p * 2          # A (bf16, 1 buffer)
        + n_p * d_p * 2        # X (bf16, 1 buffer)
        + 2 * d_p * d_p * 2    # W per layer (bf16, 2 buffers)
        + 2 * d_p * 2          # b per layer (bf16, 2 buffers)
        + n_p * d_p * 4        # output / accumulator (f32, 1 buffer)
    )
    try:
        vmem_cap = int(pltpu.get_tpu_info().vmem_capacity_bytes)
    except Exception:
        vmem_cap = 64 * 1024 * 1024   # conservative: v7x physical VMEM
    vmem_limit = int(min(max(2 * vmem_est, 16 * 1024 * 1024), (2 * vmem_cap) // 3))
    vmem_limit = max(vmem_limit, int(1.25 * vmem_est))

    kernel = functools.partial(gnn_stack_kernel, skip=skip_connections)
    out_p = pl.pallas_call(
        kernel,
        out_shape=jax.ShapeDtypeStruct((n_p, d_p), jnp.float32),
        grid_spec=pltpu.PrefetchScalarGridSpec(
            num_scalar_prefetch=0,
            grid=(layer_nr,),
            in_specs=[
                pl.BlockSpec((n_p, n_p), lambda l: (0, 0),
                             pipeline_mode=pl.Buffered(1)),          # A resident
                pl.BlockSpec((n_p, d_p), lambda l: (0, 0),
                             pipeline_mode=pl.Buffered(1)),          # X resident
                pl.BlockSpec((1, d_p, d_p), lambda l: (l, 0, 0)),    # W[l] streamed
                pl.BlockSpec((1, 1, d_p), lambda l: (l, 0, 0)),      # b[l] streamed
            ],
            out_specs=pl.BlockSpec((n_p, d_p), lambda l: (0, 0),
                                   pipeline_mode=pl.Buffered(1)),    # accumulator
        ),
        compiler_params=pltpu.CompilerParams(
            dimension_semantics=("arbitrary",),   # layers are sequential
            vmem_limit_bytes=vmem_limit,
        ),
    )(a_p, x_p, w_p, b_p)
    return out_p[:num_nodes, :feat_dim]


# ---------------------------------------------------------------------------
# Plain-JAX glue: edge_index -> dense normalized adjacency (PyG GCNConv style),
# built directly at the padded size (padded rows/cols stay exactly zero).
# ---------------------------------------------------------------------------
def build_normalized_adjacency(edge_index, num_nodes, padded_nodes=None):
    n_p = num_nodes if padded_nodes is None else padded_nodes
    src, dst = edge_index[0], edge_index[1]
    a = jnp.zeros((n_p, n_p), jnp.float32)
    # scatter-add: duplicate edges each contribute to the degree (PyG semantics)
    a = a.at[dst, src].add(1.0)
    # add_remaining_self_loops: only REAL nodes without an existing self loop
    real = jnp.arange(n_p) < num_nodes
    diag = jnp.diagonal(a)
    a = a + jnp.diag(jnp.where((diag == 0.0) & real, 1.0, 0.0))
    deg = a.sum(axis=1)
    d_inv_sqrt = jnp.where(deg > 0, jax.lax.rsqrt(deg), 0.0)
    return d_inv_sqrt[:, None] * a * d_inv_sqrt[None, :]  # D^-1/2 (A+I) D^-1/2


def pad_gnn_inputs(a_hat_p, x, w_stack, b_stack, n_p, d_p):
    """One-time lane-dense (multiple-of-128) zero-padding + bf16 cast."""
    n, d = x.shape
    layer_nr = w_stack.shape[0]
    bf16 = jnp.bfloat16
    a_p = a_hat_p.astype(bf16)     # already built at padded size
    x_p = jnp.zeros((n_p, d_p), bf16).at[:n, :d].set(x.astype(bf16))
    w_p = jnp.zeros((layer_nr, d_p, d_p), bf16).at[:, :d, :d].set(
        w_stack.astype(bf16))
    b_p = jnp.zeros((layer_nr, 1, d_p), bf16).at[:, :, :d].set(
        b_stack.astype(bf16))
    return a_p, x_p, w_p, b_p


# ---------------------------------------------------------------------------
# Deterministic parameter init (shapes from GNNFactory.__init__).
# ---------------------------------------------------------------------------
def init_params(key, layer_nr, in_dim, out_dim):
    assert in_dim == out_dim, "skip connection requires in_dim == out_dim"
    kw, kb = jax.random.split(key)
    limit = jnp.sqrt(6.0 / (in_dim + out_dim))
    w_stack = jax.random.uniform(
        kw, (layer_nr, in_dim, out_dim), jnp.float32, -limit, limit)
    # Nonzero bias so the bias path is numerically exercised by the test.
    b_stack = jax.random.uniform(
        kb, (layer_nr, 1, out_dim), jnp.float32, -0.1, 0.1)
    return w_stack, b_stack


# ---------------------------------------------------------------------------
# Pure-JAX reference. compute_dtype=bfloat16 mirrors the kernel's dtype path
# (bf16 operands, f32 accumulation); compute_dtype=float32 is the exact module.
# ---------------------------------------------------------------------------
def reference_forward(a_hat, x, w_stack, b_stack, *, skip_connections=True,
                      compute_dtype=jnp.float32):
    a = a_hat.astype(compute_dtype)
    xs = x.astype(compute_dtype).astype(jnp.float32)
    for l in range(w_stack.shape[0]):
        h = jnp.dot(xs.astype(compute_dtype), w_stack[l].astype(compute_dtype),
                    preferred_element_type=jnp.float32)
        h = jnp.dot(a, h.astype(compute_dtype),
                    preferred_element_type=jnp.float32)
        h = h + b_stack[l].astype(compute_dtype).astype(jnp.float32)
        xs = h + xs if skip_connections else h
    return xs.astype(x.dtype)


if __name__ == "__main__":
    key = jax.random.PRNGKey(0)
    k_x, k_e, k_p = jax.random.split(key, 3)

    num_nodes = 100    # N (padded to 128 once, below)
    feat_dim = 96      # in_dim == out_dim (padded to 128 once, below)
    layer_nr = 3
    num_edges = 400

    n_p = _round_up(max(num_nodes, 8), 128)
    d_p = _round_up(max(feat_dim, 8), 128)

    x = jax.random.normal(k_x, (num_nodes, feat_dim), jnp.float32)
    edge_index = jax.random.randint(k_e, (2, num_edges), 0, num_nodes, jnp.int32)

    a_hat_p = build_normalized_adjacency(edge_index, num_nodes, padded_nodes=n_p)
    a_hat = a_hat_p[:num_nodes, :num_nodes]          # unpadded view for refs
    w_stack, b_stack = init_params(k_p, layer_nr, feat_dim, feat_dim)

    # One-time padding, hoisted out of the forward path.
    a_p, x_p, w_p, b_p = pad_gnn_inputs(a_hat_p, x, w_stack, b_stack, n_p, d_p)

    out = gnn_factory_forward(a_p, x_p, w_p, b_p, num_nodes, feat_dim,
                              skip_connections=True)
    out = jax.block_until_ready(out)
    assert out.shape == (num_nodes, feat_dim)
    assert out.dtype == jnp.float32

    # Tight check vs a reference that mirrors the kernel's bf16/f32 dtype path.
    ref_bf16 = reference_forward(a_hat, x, w_stack, b_stack,
                                 skip_connections=True,
                                 compute_dtype=jnp.bfloat16)
    assert jnp.allclose(out, ref_bf16, atol=2e-2, rtol=2e-2), (
        "max abs err vs bf16-mirrored ref: "
        f"{float(jnp.max(jnp.abs(out - ref_bf16)))}")

    # Loose sanity check vs the exact f32 module semantics (bf16 quantization
    # noise; A_hat in bf16 compounds with depth — keep A in f32 if accuracy
    # of deep stacks matters).
    ref_f32 = reference_forward(a_hat, x, w_stack, b_stack,
                                skip_connections=True,
                                compute_dtype=jnp.float32)
    assert jnp.allclose(out, ref_f32, atol=0.25, rtol=0.05), (
        "max abs err vs f32 ref: "
        f"{float(jnp.max(jnp.abs(out - ref_f32)))}")

    print("KERNEL_OK")
</pallas_src>

<mosaic_0001>
module attributes {stable_mosaic.version = 11 : i64} {
  func.func @gnn_stack_kernel(%arg0: i32, %arg1: memref<128x128xbf16, #tpu.memory_space<vmem>>, %arg2: memref<128x128xbf16, #tpu.memory_space<vmem>>, %arg3: memref<1x128x128xbf16, #tpu.memory_space<vmem>>, %arg4: memref<1x1x128xbf16, #tpu.memory_space<vmem>>, %arg5: memref<128x128xf32, #tpu.memory_space<vmem>>) attributes {dimension_semantics = [#tpu.dimension_semantics<arbitrary>], iteration_bounds = array<i64: 3>, scalar_prefetch = 0 : i64, scratch_operands = 0 : i64, tpu.core_type = #tpu.core_type<tc>, window_params = [{pipeline_mode = #tpu.pipeline_mode<synchronous>, transform_indices = @transform_0, window_bounds = array<i64: 128, 128>}, {pipeline_mode = #tpu.pipeline_mode<synchronous>, transform_indices = @transform_1, window_bounds = array<i64: 128, 128>}, {transform_indices = @transform_2, window_bounds = array<i64: 1, 128, 128>}, {transform_indices = @transform_3, window_bounds = array<i64: 1, 1, 128>}, {pipeline_mode = #tpu.pipeline_mode<synchronous>, transform_indices = @transform_4, window_bounds = array<i64: 128, 128>}]} {
    %c0_i32 = arith.constant 0 : i32
    %0 = arith.cmpi eq, %arg0, %c0_i32 : i32
    %1 = arith.extui %0 : i1 to i32
    %c0_i32_0 = arith.constant 0 : i32
    %2 = arith.cmpi ne, %1, %c0_i32_0 : i32
    scf.if %2 {
      %c0_13 = arith.constant 0 : index
      %c0_14 = arith.constant 0 : index
      %18 = vector.load %arg2[%c0_13, %c0_14] : memref<128x128xbf16, #tpu.memory_space<vmem>>, vector<128x128xbf16>
      %19 = arith.extf %18 : vector<128x128xbf16> to vector<128x128xf32>
      %c0_15 = arith.constant 0 : index
      %c0_16 = arith.constant 0 : index
      %20 = vector.load %arg5[%c0_15, %c0_16] : memref<128x128xf32, #tpu.memory_space<vmem>>, vector<128x128xf32>
      tpu.vector_store %arg5[%c0_15, %c0_16], %19 {strides = array<i32>} : memref<128x128xf32, #tpu.memory_space<vmem>>, vector<128x128xf32>,
    } else {
    }
    %c0 = arith.constant 0 : index
    %c0_1 = arith.constant 0 : index
    %3 = vector.load %arg5[%c0, %c0_1] : memref<128x128xf32, #tpu.memory_space<vmem>>, vector<128x128xf32>
    %4 = arith.truncf %3 : vector<128x128xf32> to vector<128x128xbf16>
    %c0_2 = arith.constant 0 : index
    %c0_3 = arith.constant 0 : index
    %c0_4 = arith.constant 0 : index
    %5 = vector.load %arg3[%c0_2, %c0_3, %c0_4] : memref<1x128x128xbf16, #tpu.memory_space<vmem>>, vector<1x128x128xbf16>
    %6 = vector.shape_cast %5 : vector<1x128x128xbf16> to vector<128x128xbf16>
    %cst = arith.constant dense<0.000000e+00> : vector<128x128xf32>
    %7 = tpu.matmul %4, %6, %cst {dimension_numbers = #tpu.dot_dimension_numbers<[1], [0], [0], [1], [0, 0, 1, 1], [], []>} : vector<128x128xbf16>, vector<128x128xbf16>, vector<128x128xf32> -> vector<128x128xf32>
    %c0_5 = arith.constant 0 : index
    %c0_6 = arith.constant 0 : index
    %8 = vector.load %arg1[%c0_5, %c0_6] : memref<128x128xbf16, #tpu.memory_space<vmem>>, vector<128x128xbf16>
    %9 = arith.truncf %7 : vector<128x128xf32> to vector<128x128xbf16>
    %cst_7 = arith.constant dense<0.000000e+00> : vector<128x128xf32>
    %10 = tpu.matmul %8, %9, %cst_7 {dimension_numbers = #tpu.dot_dimension_numbers<[1], [0], [0], [1], [0, 0, 1, 1], [], []>} : vector<128x128xbf16>, vector<128x128xbf16>, vector<128x128xf32> -> vector<128x128xf32>
    %c0_8 = arith.constant 0 : index
    %c0_9 = arith.constant 0 : index
    %c0_10 = arith.constant 0 : index
    %11 = vector.load %arg4[%c0_8, %c0_9, %c0_10] : memref<1x1x128xbf16, #tpu.memory_space<vmem>>, vector<1x1x128xbf16>
    %12 = vector.shape_cast %11 : vector<1x1x128xbf16> to vector<1x128xbf16>
    %13 = arith.extf %12 : vector<1x128xbf16> to vector<1x128xf32>
    %14 = vector.broadcast %13 : vector<1x128xf32> to vector<128x128xf32>
    %15 = arith.addf %10, %14 : vector<128x128xf32>
    %16 = arith.addf %15, %3 : vector<128x128xf32>
    %c0_11 = arith.constant 0 : index
    %c0_12 = arith.constant 0 : index
    %17 = vector.load %arg5[%c0_11, %c0_12] : memref<128x128xf32, #tpu.memory_space<vmem>>, vector<128x128xf32>
    tpu.vector_store %arg5[%c0_11, %c0_12], %16 {strides = array<i32>} : memref<128x128xf32, #tpu.memory_space<vmem>>, vector<128x128xf32>,
    return
  }
  func.func @transform_0(%arg0: i32) -> (i32, i32) {
    %c0_i32 = arith.constant 0 : i32
    %c0_i32_0 = arith.constant 0 : i32
    %c0_i32_1 = arith.constant 0 : i32
    return %c0_i32, %c0_i32_0 : i32, i32
  }
  func.func @transform_1(%arg0: i32) -> (i32, i32) {
    %c0_i32 = arith.constant 0 : i32
    %c0_i32_0 = arith.constant 0 : i32
    %c0_i32_1 = arith.constant 0 : i32
    return %c0_i32, %c0_i32_0 : i32, i32
  }
  func.func @transform_2(%arg0: i32) -> (i32, i32, i32) {
    %c0_i32 = arith.constant 0 : i32
    %c0_i32_0 = arith.constant 0 : i32
    %c0_i32_1 = arith.constant 0 : i32
    return %arg0, %c0_i32, %c0_i32_0 : i32, i32, i32
  }
  func.func @transform_3(%arg0: i32) -> (i32, i32, i32) {
    %c0_i32 = arith.constant 0 : i32
    %c0_i32_0 = arith.constant 0 : i32
    %c0_i32_1 = arith.constant 0 : i32
    return %arg0, %c0_i32, %c0_i32_0 : i32, i32, i32
  }
  func.func @transform_4(%arg0: i32) -> (i32, i32) {
    %c0_i32 = arith.constant 0 : i32
    %c0_i32_0 = arith.constant 0 : i32
    %c0_i32_1 = arith.constant 0 : i32
    return %c0_i32, %c0_i32_0 : i32, i32
  }
}

</mosaic_0001>

<bundles_post_ra>
// kernel: tpu_custom_call.1
= control target key start
LH: loop header
LB: loop body
LE: loop exit
PB: predicated region body
PF: predicated region fallthrough
CT: control target
= control target key end

     0   :  { %9 = vsyncpa [#allocation3], 0  ;;  %s1337_s0 = inlined_call_operand.hbm [shape: bf16[128,128], index: 0, kind: input, shape index: {}]   ;;  %s1338_s1 = inlined_call_operand.hbm [shape: bf16[128,128], index: 1, kind: input, shape index: {}]   ;;  %s1339_s2 = inlined_call_operand.hbm [shape: bf16[3,128,128], index: 2, kind: input, shape index: {}]   ;;  %s1340_s3 = inlined_call_operand.vmem [shape: bf16[3,1,128], index: 3, kind: input, shape index: {}]   ;;  %s1341_s4 = inlined_call_operand.hbm [shape: f32[128,128], index: 4, kind: output, shape index: {}]  }
   0x1   :  { %10 = vsyncpa [#allocation6], 0 }
   0x2   :  { %11 = vsyncpa [#allocation4], 0  ;;  %s1107_s15 = smov 0   ;;  %s1109_s16 = smov 0  }
   0x3   :  { %s1111_s17 = smov 0   ;;  %s1113_s18 = smov 0  }
   0x4 LB: > { %s1126_s19 = sadd.s32 4294967295, %s1073_s18   ;;  %p79_p0 = scmp.ne.s32.totalorder %s1065_s16, %s1061_s15  ;;  %s1073_s18 = sphi %s1113_s18, %s1348_s18   ;;  %s1069_s17 = sphi %s1111_s17, %s1347_s17   ;;  %s1065_s16 = sphi %s1109_s16, %s1346_s16   ;;  %s1061_s15 = sphi %s1107_s15, %s1345_s15  }
   0x5   : > { %p80_p1 = scmp.eq.s32.totalorder %s1126_s19, 0  ;;  %p686_p2 = scmp.ge.s32.totalorder %s1073_s18, 1 }
   0x6   : > { %p137_p3 = scmp.lt.s32.totalorder %s1073_s18, 4  ;;  %p687_p4 = scmp.ne.s32.totalorder %s1126_s19, 0 }
   0x7   : > { %p1135_p5 = por %p80_p1, %p79_p0  ;;  %s148_s23 = sshll.u32 %s1337_s0, 4  ;;  %s149_s23 = int_to_ptr.hbm [resolvable:$true] %s148_s23 }
   0x8   : > { %p1142_p6 = pnand %p686_p2, %p137_p3  ;;  %s1075_s25 = smov [#allocation2]  }
   0x9   : > { %s150_s26 = sshll.u32 %s1075_s25, 4  ;;  %s162_s29 = sshll.u32 %s1338_s1, 4  ;;  %s151_s26 = int_to_ptr.vmem [resolvable:$true] %s150_s26  ;;  %s163_s29 = int_to_ptr.hbm [resolvable:$true] %s162_s29 }
   0xa   : > { %p852_p7 = pneg %p1142_p6  ;;  %s1076_s30 = smov 64  }
   0xb   : > { %s1077_s5 = smov 4   ;;  %s1078_s6 = smov [#allocation5]  }
   0xc   : > { %p853_p8 = pnand %p852_p7, %p80_p1  ;;  %s164_s7 = sshll.u32 %s1078_s6, 4  ;;  %s165_s7 = int_to_ptr.vmem [resolvable:$true] %s164_s7 }
   0xd   : > { %s1160_s8 = sadd.s32 1, %s1073_s18   ;;  %s66_s9 = sadd.s32 1, %s1069_s17 }
   0xe   : > { %855 = dma.hbm_to_vmem [thread:$0]  (!%p853_p8), %s149_s23, 1024, %s151_s26, [#allocation3], %s1076_s30, %s1076_s30, %s1077_s5  }
   0xf   : > { %858 = dma.hbm_to_vmem [thread:$0]  (!%p853_p8), %s163_s29, 1024, %s165_s7, [#allocation6], %s1076_s30, %s1076_s30, %s1077_s5  }
  0x10   : > { %s63_s10 = ssub.s32 %s1073_s18, %s1160_s8  ;;  %p73_p9 = scmp.ne.s32.totalorder %s1069_s17, %s1065_s16 }
  0x11   : > { %p64_p10 = scmp.eq.s32.totalorder %s63_s10, 0  ;;  %p74_p11 = scmp.eq.s32.totalorder %s1073_s18, 0 }
  0x12   : > { %p865_p12 = scmp.lt.s32.totalorder %s1073_s18, 3  ;;  %s178_s11 = sand.u32 1, %s1073_s18  }
  0x13   : > { %s1171_s12 = scalar_select %p64_p10, %s1069_s17, %s66_s9  }
  0x14   : > { %p75_p13 = por %p74_p11, %p73_p9  ;;  %s180_s13 = sand.u32 1, %s1069_s17  }
  0x15   : > { %s766_s14 = sshll.u32 %s1073_s18, 6  ;;  %s690_s15 = sshll.u32 %s180_s13, 6 }
  0x16   : > { %s187_s23 = scalar_lea.hbm %s1339_s2, %s766_s14  ;;  %s182_s26 = scalar_lea.vmem [#allocation7], %s690_s15 }
  0x17   : > { %s188_s25 = sshll.u32 %s187_s23, 4  ;;  %s190_s27 = sshll.u32 %s182_s26, 4  ;;  %s189_s25 = int_to_ptr.hbm [resolvable:$true] %s188_s25  ;;  %s191_s27 = int_to_ptr.vmem [resolvable:$true] %s190_s27 }
  0x18   : > { %p1180_p0 = pnand %p865_p12, %p75_p13  ;;  %s179_s29 = scalar_lea.sflag [#allocation3], %s178_s11 }
  0x19   : > { %s969_s6 = sshra.s32 %s189_s25, 4  ;;  %s976_s13 = scalar_lea.hbm %s1339_s2, 192  ;;  %s970_s6 = int_to_ptr.hbm [resolvable:$true] %s969_s6 }
  0x1a   : > { %s971_s7 = scalar_lea.hbm %s970_s6, 64  ;;  %p973_p3 = pneg %p1180_p0 }
  0x1b   : > { %p972_p2 = scmp.ne.s32.totalorder %s970_s6, %s971_s7  ;;  %p977_p9 = scmp.lt.s32.totalorder %s970_s6, %s1339_s2 }
  0x1c   : > { %p978_p10 = scmp.lt.s32.totalorder %s976_s13, %s971_s7 }
  0x1d   : > { %p974_p7 = pnand %p973_p3, %p972_p2 }
  0x1e   : > { %p979_p11 = por %p978_p10, %p977_p9 }
  0x1f   : > { %p975_p8 = pneg %p974_p7 }
  0x21   : > { %p980_p12 = pnand %p979_p11, %p975_p8 }
  0x23   : > { %983 = shalt.err (!%p980_p12)
}
  0x24   : > { %862 = dma.hbm_to_vmem [thread:$0]  (!%p1180_p0), %s189_s25, 1024, %s191_s27, %s179_s29, %s1076_s30, %s1076_s30, %s1077_s5  }
  0x25   : > { %208 = sbr.rel (%p1142_p6) target bundleno = 522 (0x20a), region = 36 }
  0x2a   : > { %1044 = dma.done.wait (%p80_p1), [#allocation3], 1024  }
  0x2b   : > { %1046 = vsyncadd (%p80_p1), [#allocation3], 4294966272 }
  0x2c   : > { %1048 = dma.done.wait (%p80_p1), [#allocation6], 1024  }
  0x2d   : > { %1050 = vsyncadd (%p80_p1), [#allocation6], 4294966272  ;;  %s220_s11 = sand.u32 1, %s1126_s19   ;;  %s222_s30 = sand.u32 1, %s1065_s16  }
  0x2e   : > { %s696_s5 = sshll.u32 %s222_s30, 6  ;;  %s221_s24 = scalar_lea.sflag [#allocation3], %s220_s11 }
  0x2f   : > { %s1209_s15 = scalar_lea.vmem [#allocation7], %s696_s5 }
  0x30   : > { %1052 = dma.done.wait (%p1135_p5), %s221_s24, 1024  }
  0x31   : > { %1054 = vsyncadd (%p1135_p5), %s221_s24, 4294966272  ;;  %p248_p6 = scmp.lt.s32.totalorder %s1126_s19, 2  ;;  %254 = sbr.rel (%p687_p4) target bundleno = 73 (0x49), region = 52 }
  0x33   : > { %s1217_s21 = scalar_select %p248_p6, %s1126_s19, 2 }
  0x35   : > { %s250_s25 = scalar_lea.vmem %s1340_s3, %s1217_s21 }
  0x36   : > { %v784_v0 = vld [vmem:[#allocation5] sm:$0xff]   ;;  %v815_v1 = vld [vmem:[#allocation5 + $0x8] sm:$0xff]   ;;  %v816_v2 = vld [vmem:[#allocation5 + $0x10] sm:$0xff]  }
  0x37   : > { %v785_v3 = vunpack.c.l.bf16 %v784_v0  ;;  %v786_v4 = vunpack.c.h.bf16 %v784_v0  ;;  %v789_v5 = vunpack.c.l.bf16 %v815_v1  ;;  %v790_v6 = vunpack.c.h.bf16 %v815_v1  ;;  %v817_v7 = vld [vmem:[#allocation5 + $0x18] sm:$0xff]   ;;  %v818_v10 = vld [vmem:[#allocation5 + $0x20] sm:$0xff]   ;;  %v819_v13 = vld [vmem:[#allocation5 + $0x28] sm:$0xff]  }
  0x38   : > { %v793_v8 = vunpack.c.l.bf16 %v816_v2  ;;  %v794_v9 = vunpack.c.h.bf16 %v816_v2  ;;  %v797_v11 = vunpack.c.l.bf16 %v817_v7  ;;  %v798_v12 = vunpack.c.h.bf16 %v817_v7  ;;  %v820_v16 = vld [vmem:[#allocation5 + $0x30] sm:$0xff]   ;;  %v821_v19 = vld [vmem:[#allocation5 + $0x38] sm:$0xff]  }
  0x39   : > { %287 = vst [vmem:[#allocation8] sm:$0xff] %v785_v3  ;;  %v801_v14 = vunpack.c.l.bf16 %v818_v10  ;;  %v802_v15 = vunpack.c.h.bf16 %v818_v10  ;;  %v805_v17 = vunpack.c.l.bf16 %v819_v13  ;;  %v806_v18 = vunpack.c.h.bf16 %v819_v13 }
  0x3a   : > { %288 = vst [vmem:[#allocation8 + $0x8] sm:$0xff] %v786_v4  ;;  %v809_v20 = vunpack.c.l.bf16 %v820_v16  ;;  %v810_v21 = vunpack.c.h.bf16 %v820_v16  ;;  %v813_v22 = vunpack.c.l.bf16 %v821_v19  ;;  %v814_v23 = vunpack.c.h.bf16 %v821_v19 }
  0x3b   : > { %289 = vst [vmem:[#allocation8 + $0x10] sm:$0xff] %v789_v5 }
  0x3c   : > { %290 = vst [vmem:[#allocation8 + $0x18] sm:$0xff] %v790_v6 }
  0x3d   : > { %291 = vst [vmem:[#allocation8 + $0x20] sm:$0xff] %v793_v8 }
  0x3e   : > { %292 = vst [vmem:[#allocation8 + $0x28] sm:$0xff] %v794_v9 }
  0x3f   : > { %293 = vst [vmem:[#allocation8 + $0x30] sm:$0xff] %v797_v11 }
  0x40   : > { %294 = vst [vmem:[#allocation8 + $0x38] sm:$0xff] %v798_v12 }
  0x41   : > { %295 = vst [vmem:[#allocation8 + $0x40] sm:$0xff] %v801_v14 }
  0x42   : > { %296 = vst [vmem:[#allocation8 + $0x48] sm:$0xff] %v802_v15 }
  0x43   : > { %297 = vst [vmem:[#allocation8 + $0x50] sm:$0xff] %v805_v17 }
  0x44   : > { %298 = vst [vmem:[#allocation8 + $0x58] sm:$0xff] %v806_v18 }
  0x45   : > { %299 = vst [vmem:[#allocation8 + $0x60] sm:$0xff] %v809_v20 }
  0x46   : > { %300 = vst [vmem:[#allocation8 + $0x68] sm:$0xff] %v810_v21 }
  0x47   : > { %301 = vst [vmem:[#allocation8 + $0x70] sm:$0xff] %v813_v22 }
  0x48   : > { %302 = vst [vmem:[#allocation8 + $0x78] sm:$0xff] %v814_v23 }
  0x49 PF: > { %v774_v24 = vld [vmem:[%s1209_s15 + $0x38] sm:$0xff]  ;;  %v773_v25 = vld [vmem:[%s1209_s15 + $0x30] sm:$0xff]  ;;  %v772_v26 = vld [vmem:[%s1209_s15 + $0x28] sm:$0xff]  ;;  %s1079_s27 = smov [#allocation8]   ;;  %s603_s7 = sshll.u32 %s1341_s4, 4  ;;  %s604_s7 = int_to_ptr.hbm [resolvable:$true] %s603_s7 }
  0x4a   : > { %822 = vmatpush.bf16.msra.mxu2 %v774_v24  ;;  %391 = vmatpush.bf16.msra.mxu0 %v774_v24  ;;  %v771_v27 = vld [vmem:[%s1209_s15 + $0x20] sm:$0xff]  ;;  %v770_v28 = vld [vmem:[%s1209_s15 + $0x18] sm:$0xff]  ;;  %v769_v29 = vld [vmem:[%s1209_s15 + $0x10] sm:$0xff]  ;;  %s601_s28 = sshll.u32 %s1079_s27, 4  ;;  %p868_p1 = scmp.eq.s32.totalorder %s1126_s19, 2  ;;  %s602_s28 = int_to_ptr.vmem [resolvable:$true] %s601_s28 }
  0x4b   : > { %v768_v30 = vld [vmem:[%s1209_s15 + $0x8] sm:$0xff]  ;;  %v767_v31 = vld [vmem:[%s1209_s15] sm:$0xff]  ;;  %v1245_v38 = vld [vmem:[#allocation8 + $0x50] sm:$0xff]  ;;  %s1080_s9 = smov 128   ;;  %s1081_s10 = smov 8  }
  0x4c   : > { %v1233_v32 = vld [vmem:[#allocation8 + $0x40] sm:$0xff]  ;;  %v1235_v33 = vld [vmem:[#allocation8 + $0x48] sm:$0xff]  ;;  %v1247_v39 = vld [vmem:[#allocation8 + $0x58] sm:$0xff] }
  0x4d   : > { %v1237_v34 = vld [vmem:[#allocation8] sm:$0xff]  ;;  %v1239_v35 = vld [vmem:[#allocation8 + $0x8] sm:$0xff]  ;;  %v323_v36 = vpack.c.bf16 %v1235_v33, %v1233_v32  ;;  %v1249_v40 = vld [vmem:[#allocation8 + $0x10] sm:$0xff]  ;;  %v324_v42 = vpack.c.bf16 %v1247_v39, %v1245_v38 }
  0x4e   : > { %823 = vmatpush.bf16.msra.mxu2 %v773_v25  ;;  %392 = vmatpush.bf16.msra.mxu0 %v773_v25  ;;  %v319_v37 = vpack.c.bf16 %v1239_v35, %v1237_v34  ;;  %v1251_v41 = vld [vmem:[#allocation8 + $0x18] sm:$0xff]  ;;  %v1257_v44 = vld [vmem:[#allocation8 + $0x60] sm:$0xff]  ;;  %v1259_v45 = vld [vmem:[#allocation8 + $0x68] sm:$0xff] }
  0x4f   : > { %v320_v43 = vpack.c.bf16 %v1251_v41, %v1249_v40  ;;  %v1261_v46 = vld [vmem:[#allocation8 + $0x20] sm:$0xff]  ;;  %v1263_v47 = vld [vmem:[#allocation8 + $0x28] sm:$0xff]  ;;  %v325_v48 = vpack.c.bf16 %v1259_v45, %v1257_v44  ;;  %v1269_v50 = vld [vmem:[#allocation8 + $0x70] sm:$0xff] }
  0x50   : > { %v321_v49 = vpack.c.bf16 %v1263_v47, %v1261_v46  ;;  %v1271_v51 = vld [vmem:[#allocation8 + $0x78] sm:$0xff]  ;;  %v1273_v52 = vld [vmem:[#allocation8 + $0x30] sm:$0xff]  ;;  %v775_v16 = vld [vmem:[#allocation2] sm:$0xff] }
  0x51   : > { %v1275_v53 = vld [vmem:[#allocation8 + $0x38] sm:$0xff]  ;;  %v326_v54 = vpack.c.bf16 %v1271_v51, %v1269_v50  ;;  %v779_v17 = vld [vmem:[#allocation2 + $0x20] sm:$0xff]  ;;  %v776_v18 = vld [vmem:[#allocation2 + $0x8] sm:$0xff] }
  0x52   : > { %824 = vmatpush.bf16.msra.mxu2 %v772_v26  ;;  %393 = vmatpush.bf16.msra.mxu0 %v772_v26  ;;  %v322_v55 = vpack.c.bf16 %v1275_v53, %v1273_v52  ;;  %v780_v19 = vld [vmem:[#allocation2 + $0x28] sm:$0xff]  ;;  %v777_v20 = vld [vmem:[#allocation2 + $0x10] sm:$0xff]  ;;  %v778_v22 = vld [vmem:[#allocation2 + $0x18] sm:$0xff] }
  0x53   : > { %v781_v21 = vld [vmem:[#allocation2 + $0x30] sm:$0xff]  ;;  %v782_v23 = vld [vmem:[#allocation2 + $0x38] sm:$0xff]  ;;  %v464_v24 = vld [vmem:[%s250_s25] sm:$0x1] }
  0x54   : > { %v465_v25 = vunpack.c.l.bf16 %v464_v24 }
  0x56   : > { %825 = vmatpush.bf16.msra.mxu2 %v771_v27  ;;  %394 = vmatpush.bf16.msra.mxu0 %v771_v27  ;;  %v1286_v26 = vperm.slane %v465_v25, 0 }
  0x5a   : > { %826 = vmatpush.bf16.msra.mxu2 %v770_v28  ;;  %395 = vmatpush.bf16.msra.mxu0 %v770_v28 }
  0x5e   : > { %827 = vmatpush.bf16.msra.mxu2 %v769_v29  ;;  %396 = vmatpush.bf16.msra.mxu0 %v769_v29 }
  0x62   : > { %828 = vmatpush.bf16.msra.mxu2 %v768_v30  ;;  %397 = vmatpush.bf16.msra.mxu0 %v768_v30 }
  0x66   : > { %829 = vmatpush.bf16.msra.mxu2 %v767_v31  ;;  %398 = vmatpush.bf16.msra.mxu0 %v767_v31 }
  0x69   : > { %419 = vmatmul.bf16.vlgmr.msra.gmra.mxu2 %v323_v36  ;;  %399 = vmatmul.bf16.vlgmr.msra.gmra.mxu0 %v319_v37 }
  0x79   : > { %424 = vmatmul.bf16.gmra.mxu2 %v324_v42  ;;  %404 = vmatmul.bf16.gmra.mxu0 %v320_v43 }
  0x89   : > { %429 = vmatmul.bf16.gmra.mxu2 %v325_v48  ;;  %409 = vmatmul.bf16.gmra.mxu0 %v321_v49 }
  0x99   : > { %434 = vmatmul.bf16.gmra.mxu2 %v326_v54  ;;  %414 = vmatmul.bf16.gmra.mxu0 %v322_v55 }
  0xe6   : > { %v400_v57 = vpop.f32.mrf.mxu0 }
  0xec   : > { %v420_v56 = vpop.f32.mrf.mxu2 }
  0xee   : > { %v402_v59 = vpop.f32.mrf.mxu0 }
  0xef   : > { %v456_v15 = vpack.c.bf16 %v402_v59, %v400_v57 }
  0xf4   : > { %v422_v58 = vpop.f32.mrf.mxu2 }
  0xf5   : > { %v460_v10 = vpack.c.bf16 %v422_v58, %v420_v56 }
  0xf6   : > { %v405_v61 = vpop.f32.mrf.mxu0 }
  0xfc   : > { %v425_v60 = vpop.f32.mrf.mxu2 }
  0xfe   : > { %v407_v63 = vpop.f32.mrf.mxu0 }
  0xff   : > { %v457_v14 = vpack.c.bf16 %v407_v63, %v405_v61 }
 0x104   : > { %v427_v62 = vpop.f32.mrf.mxu2 }
 0x105   : > { %v461_v9 = vpack.c.bf16 %v427_v62, %v425_v60 }
 0x106   : > { %v410_v1 = vpop.f32.mrf.mxu0 }
 0x10c   : > { %v430_v0 = vpop.f32.mrf.mxu2 }
 0x10e   : > { %v412_v4 = vpop.f32.mrf.mxu0 }
 0x10f   : > { %v458_v13 = vpack.c.bf16 %v412_v4, %v410_v1 }
 0x114   : > { %v432_v2 = vpop.f32.mrf.mxu2 }
 0x115   : > { %v462_v8 = vpack.c.bf16 %v432_v2, %v430_v0 }
 0x116   : > { %v415_v7 = vpop.f32.mrf.mxu0 }
 0x11c   : > { %v435_v3 = vpop.f32.mrf.mxu2 }
 0x11e   : > { %v417_v11 = vpop.f32.mrf.mxu0 }
 0x11f   : > { %v459_v12 = vpack.c.bf16 %v417_v11, %v415_v7 }
 0x124   : > { %v437_v5 = vpop.f32.mrf.mxu2 }
 0x125   : > { %v463_v6 = vpack.c.bf16 %v437_v5, %v435_v3 }
 0x127   : > { %515 = vmatpush.bf16.msra.mxu1 %v463_v6  ;;  %830 = vmatpush.bf16.msra.mxu3 %v463_v6 }
 0x12b   : > { %516 = vmatpush.bf16.msra.mxu1 %v462_v8  ;;  %831 = vmatpush.bf16.msra.mxu3 %v462_v8 }
 0x12f   : > { %517 = vmatpush.bf16.msra.mxu1 %v461_v9  ;;  %832 = vmatpush.bf16.msra.mxu3 %v461_v9 }
 0x133   : > { %518 = vmatpush.bf16.msra.mxu1 %v460_v10  ;;  %833 = vmatpush.bf16.msra.mxu3 %v460_v10 }
 0x137   : > { %519 = vmatpush.bf16.msra.mxu1 %v459_v12  ;;  %834 = vmatpush.bf16.msra.mxu3 %v459_v12 }
 0x13b   : > { %520 = vmatpush.bf16.msra.mxu1 %v458_v13  ;;  %835 = vmatpush.bf16.msra.mxu3 %v458_v13 }
 0x13f   : > { %521 = vmatpush.bf16.msra.mxu1 %v457_v14  ;;  %836 = vmatpush.bf16.msra.mxu3 %v457_v14 }
 0x143   : > { %522 = vmatpush.bf16.msra.mxu1 %v456_v15  ;;  %837 = vmatpush.bf16.msra.mxu3 %v456_v15 }
 0x146   : > { %523 = vmatmul.bf16.vlgmr.msra.gmra.mxu1 %v775_v16  ;;  %543 = vmatmul.bf16.vlgmr.msra.gmra.mxu3 %v779_v17 }
 0x156   : > { %528 = vmatmul.bf16.gmra.mxu1 %v776_v18  ;;  %548 = vmatmul.bf16.gmra.mxu3 %v780_v19 }
 0x166   : > { %533 = vmatmul.bf16.gmra.mxu1 %v777_v20  ;;  %553 = vmatmul.bf16.gmra.mxu3 %v781_v21 }
 0x176   : > { %538 = vmatmul.bf16.gmra.mxu1 %v778_v22  ;;  %558 = vmatmul.bf16.gmra.mxu3 %v782_v23 }
 0x1c3   : > { %v524_v27 = vpop.f32.mrf.mxu1 }
 0x1c4   : > { %v525_v28 = vadd.f32 %v524_v27, %v1286_v26 }
 0x1c6   : > { %v564_v29 = vadd.f32 %v525_v28, %v1237_v34 }
 0x1c8   : > { %580 = vst [vmem:[#allocation8] sm:$0xff] %v564_v29 }
 0x1c9   : > { %v544_v30 = vpop.f32.mrf.mxu3 }
 0x1ca   : > { %v545_v31 = vadd.f32 %v544_v30, %v1286_v26 }
 0x1cb   : > { %v526_v36 = vpop.f32.mrf.mxu1 }
 0x1cc   : > { %v572_v37 = vadd.f32 %v545_v31, %v1233_v32  ;;  %v527_v42 = vadd.f32 %v526_v36, %v1286_v26 }
 0x1ce   : > { %588 = vst [vmem:[#allocation8 + $0x40] sm:$0xff] %v572_v37  ;;  %v565_v43 = vadd.f32 %v527_v42, %v1239_v35 }
 0x1d0   : > { %581 = vst [vmem:[#allocation8 + $0x8] sm:$0xff] %v565_v43 }
 0x1d1   : > { %v546_v48 = vpop.f32.mrf.mxu3 }
 0x1d2   : > { %v547_v49 = vadd.f32 %v546_v48, %v1286_v26 }
 0x1d3   : > { %v529_v54 = vpop.f32.mrf.mxu1 }
 0x1d4   : > { %v573_v55 = vadd.f32 %v547_v49, %v1235_v33  ;;  %v530_v34 = vadd.f32 %v529_v54, %v1286_v26 }
 0x1d6   : > { %589 = vst [vmem:[#allocation8 + $0x48] sm:$0xff] %v573_v55  ;;  %v566_v56 = vadd.f32 %v530_v34, %v1249_v40 }
 0x1d8   : > { %582 = vst [vmem:[#allocation8 + $0x10] sm:$0xff] %v566_v56 }
 0x1d9   : > { %v549_v57 = vpop.f32.mrf.mxu3 }
 0x1da   : > { %v550_v32 = vadd.f32 %v549_v57, %v1286_v26 }
 0x1db   : > { %v531_v58 = vpop.f32.mrf.mxu1 }
 0x1dc   : > { %v574_v59 = vadd.f32 %v550_v32, %v1245_v38  ;;  %v532_v35 = vadd.f32 %v531_v58, %v1286_v26 }
 0x1de   : > { %590 = vst [vmem:[#allocation8 + $0x50] sm:$0xff] %v574_v59  ;;  %v567_v60 = vadd.f32 %v532_v35, %v1251_v41 }
 0x1e0   : > { %583 = vst [vmem:[#allocation8 + $0x18] sm:$0xff] %v567_v60 }
 0x1e1   : > { %v551_v61 = vpop.f32.mrf.mxu3 }
 0x1e2   : > { %v552_v33 = vadd.f32 %v551_v61, %v1286_v26 }
 0x1e3   : > { %v534_v62 = vpop.f32.mrf.mxu1 }
 0x1e4   : > { %v575_v63 = vadd.f32 %v552_v33, %v1247_v39  ;;  %v535_v40 = vadd.f32 %v534_v62, %v1286_v26 }
 0x1e6   : > { %591 = vst [vmem:[#allocation8 + $0x58] sm:$0xff] %v575_v63  ;;  %v568_v0 = vadd.f32 %v535_v40, %v1261_v46 }
 0x1e8   : > { %584 = vst [vmem:[#allocation8 + $0x20] sm:$0xff] %v568_v0 }
 0x1e9   : > { %v554_v1 = vpop.f32.mrf.mxu3 }
 0x1ea   : > { %v555_v38 = vadd.f32 %v554_v1, %v1286_v26 }
 0x1eb   : > { %v536_v2 = vpop.f32.mrf.mxu1 }
 0x1ec   : > { %v576_v3 = vadd.f32 %v555_v38, %v1257_v44  ;;  %v537_v41 = vadd.f32 %v536_v2, %v1286_v26 }
 0x1ee   : > { %592 = vst [vmem:[#allocation8 + $0x60] sm:$0xff] %v576_v3  ;;  %v569_v4 = vadd.f32 %v537_v41, %v1263_v47 }
 0x1f0   : > { %585 = vst [vmem:[#allocation8 + $0x28] sm:$0xff] %v569_v4 }
 0x1f1   : > { %v556_v5 = vpop.f32.mrf.mxu3 }
 0x1f2   : > { %v557_v39 = vadd.f32 %v556_v5, %v1286_v26 }
 0x1f3   : > { %v539_v6 = vpop.f32.mrf.mxu1 }
 0x1f4   : > { %v577_v7 = vadd.f32 %v557_v39, %v1259_v45  ;;  %v540_v46 = vadd.f32 %v539_v6, %v1286_v26 }
 0x1f6   : > { %593 = vst [vmem:[#allocation8 + $0x68] sm:$0xff] %v577_v7  ;;  %v570_v8 = vadd.f32 %v540_v46, %v1273_v52 }
 0x1f8   : > { %586 = vst [vmem:[#allocation8 + $0x30] sm:$0xff] %v570_v8 }
 0x1f9   : > { %v559_v44 = vpop.f32.mrf.mxu3 }
 0x1fa   : > { %v560_v9 = vadd.f32 %v559_v44, %v1286_v26 }
 0x1fb   : > { %v541_v10 = vpop.f32.mrf.mxu1 }
 0x1fc   : > { %v578_v47 = vadd.f32 %v560_v9, %v1269_v50  ;;  %v542_v11 = vadd.f32 %v541_v10, %v1286_v26 }
 0x1fe   : > { %594 = vst [vmem:[#allocation8 + $0x70] sm:$0xff] %v578_v47  ;;  %v571_v12 = vadd.f32 %v542_v11, %v1275_v53 }
 0x200   : > { %587 = vst [vmem:[#allocation8 + $0x38] sm:$0xff] %v571_v12 }
 0x201   : > { %v561_v45 = vpop.f32.mrf.mxu3 }
 0x202   : > { %v562_v52 = vadd.f32 %v561_v45, %v1286_v26 }
 0x204   : > { %v579_v50 = vadd.f32 %v562_v52, %v1271_v51 }
 0x206   : > { %595 = vst [vmem:[#allocation8 + $0x78] sm:$0xff] %v579_v50 }
 0x207   : > { %849 = dma.vmem_to_hbm [thread:$0]  (%p868_p1), %s602_s28, 2048, %s604_s7, [#allocation4], %s1080_s9, %s1080_s9, %s1081_s10  }
 0x208   : > { %1056 = dma.done.wait (%p868_p1), [#allocation4], 2048  }
 0x209   : > { %1058 = vsyncadd (%p868_p1), [#allocation4], 4294965248 }
 0x20a PF: > { %p14_p4 = scmp.ge.s32.totalorder %s1160_s8, 5   ;;  %s1345_s15 = smov %s1065_s16 }
 0x20b   : > { %s1346_s16 = smov %s1069_s17  ;;  %s1347_s17 = smov %s1171_s12 }
 0x20c   : > { %s1348_s18 = smov %s1160_s8  ;;  %16 = sbr.rel (!%p14_p4) target bundleno = 4 (0x4), region = 87 }
 0x211   :  { %620 = vsyncpa [#allocation3], 1 }
 0x212   :  { %622 = vsyncpa [#allocation3 + $0x1], 1 }
 0x213   :  { %623 = vsyncpa [#allocation6], 1 }
 0x214   :  { %624 = vsyncpa [#allocation4], 1 }
 0x215   :  { %626 = vsyncpa [#allocation4 + $0x1], 1 }

</bundles_post_ra>
